<compile_context>
chip_gen: v6e
topology: v6e:2x2x1
jax: 0.10.0
libtpu: 0.0.40
codegen_flags: <defaults>
</compile_context>

<pallas_src>
import functools
import math

import jax
import jax.numpy as jnp
import numpy as np
from jax.experimental import pallas as pl
from jax.experimental.pallas import tpu as pltpu


def _lambda_shortcut_kernel(x_ref, sel_ref, o_ref, *, C, pad, exact_f32):
    """One batch tile per grid step.

    x_ref:   (TB*C, H*W)        flattened input images (lane-dense loads)
    sel_ref: (H*W, Ho*Wo)       0/1 (bf16) matrix implementing the ::2, ::2 gather
    o_ref:   (TB, C_out, Ho*Wo) lane-dense output tile (single full-block store)
    """
    TB, C_out, HoWo = o_ref.shape
    sel = sel_ref[...]                                      # 0/1, exact in bf16

    if exact_f32:
        # Exact 3-way bf16 split of the f32 input: x == x_hi + x_mid + x_lo.
        # Each output element has exactly one 0/1 contributor, so three
        # single-pass bf16 matmuls with f32 accumulation reproduce the f32
        # values bit-(near-)exactly at half the MXU cost of Precision.HIGHEST.
        x = x_ref[...]
        x_hi = x.astype(jnp.bfloat16)
        r1 = x - x_hi.astype(jnp.float32)
        x_mid = r1.astype(jnp.bfloat16)
        x_lo = (r1 - x_mid.astype(jnp.float32)).astype(jnp.bfloat16)
        ds = (jnp.dot(x_hi, sel, preferred_element_type=jnp.float32)
              + jnp.dot(x_mid, sel, preferred_element_type=jnp.float32)
              + jnp.dot(x_lo, sel, preferred_element_type=jnp.float32))
    else:
        # bf16 (or other) inputs: one native MXU pass, exact for 0/1 weights.
        ds = jnp.dot(x_ref[...], sel, preferred_element_type=jnp.float32)

    ds = ds.astype(o_ref.dtype).reshape(TB, C, HoWo)        # (TB, C, Ho*Wo)

    # Single full-block store: zero pad bands concatenated around the data
    # band (every output element written exactly once, no VMEM bounce).
    if pad > 0:
        zeros = jnp.zeros((TB, pad, HoWo), dtype=o_ref.dtype)
        out_block = jnp.concatenate([zeros, ds, zeros], axis=1)
    else:
        out_block = ds
    o_ref[...] = out_block


def lambda_layer(x, planes, *, block_bytes=2 << 20):
    """JAX wrapper reproducing LambdaLayer(lambda x: F.pad(x[:,:,::2,::2], ...))."""
    B, C, H, W = x.shape
    pad = planes // 4
    C_out = C + 2 * pad
    Ho, Wo = (H + 1) // 2, (W + 1) // 2                      # matches PyTorch ::2
    HW, HoWo = H * W, Ho * Wo

    exact_f32 = (x.dtype == jnp.float32)
    sel_dtype = jnp.bfloat16 if x.dtype in (jnp.float32, jnp.bfloat16) else x.dtype

    # Guard the quadratic-size selection matrix (grows as (H*W)^2 / 4): beyond
    # CIFAR-ish spatial sizes use a factored column-select + strided-row path.
    sel_bytes = HW * HoWo * jnp.dtype(sel_dtype).itemsize
    assert sel_bytes <= (4 << 20), (
        f"selection matrix would be {sel_bytes / 2**20:.1f} MiB; use a factored "
        "(W, Wo) column-select + row-strided load for spatial sizes beyond CIFAR")

    # 0/1 selection matrix: column (i*Wo + j) picks input element (2i)*W + 2j.
    sel_np = np.zeros((HW, HoWo), dtype=np.float32)
    src = (2 * np.arange(Ho))[:, None] * W + 2 * np.arange(Wo)[None, :]
    sel_np[src.reshape(-1), np.arange(HoWo)] = 1.0
    sel = jnp.asarray(sel_np, dtype=sel_dtype)               # 0/1 exact in bf16

    # Batch-tile size: ~block_bytes of input per step, capped so the grid keeps
    # >= 4 steps when possible (megacore sharding + pipeline overlap), and with
    # the input block's sublane dim (tb*C) aligned to the dtype's row tile.
    bytes_per_img = C * HW * x.dtype.itemsize
    tb = int(max(1, block_bytes // max(1, bytes_per_img)))
    tb = min(tb, max(1, -(-B // 4)))                         # keep nb >= 4 if B allows
    tb = min(tb, B)
    row_tile = 16 if x.dtype.itemsize == 2 else 8            # bf16 packs 2 rows/sublane
    if (tb * C) % row_tile != 0 and tb != B:
        step = row_tile // math.gcd(C, row_tile)
        tb = int(min(B, -(-tb // step) * step))
    nb = pl.cdiv(B, tb)

    xf = x.reshape(B * C, HW)                                # free metadata reshape

    kernel = functools.partial(_lambda_shortcut_kernel, C=C, pad=pad,
                               exact_f32=exact_f32)
    out = pl.pallas_call(
        kernel,
        out_shape=jax.ShapeDtypeStruct((B, C_out, HoWo), x.dtype),
        grid=(nb,),
        in_specs=[
            pl.BlockSpec((tb * C, HW), lambda b: (b, 0)),
            pl.BlockSpec((HW, HoWo), lambda b: (0, 0)),      # resident across steps
        ],
        out_specs=pl.BlockSpec((tb, C_out, HoWo), lambda b: (b, 0, 0)),
        compiler_params=pltpu.CompilerParams(
            dimension_semantics=("parallel",),               # shards over v7x's 2 TCs
            vmem_limit_bytes=32 << 20,                       # headroom on v5e's 16 MiB default
        ),
    )(xf, sel)
    return out.reshape(B, C_out, Ho, Wo)


def _reference(x, planes):
    pad = planes // 4
    ds = x[:, :, ::2, ::2]
    return jnp.pad(ds, ((0, 0), (pad, pad), (0, 0), (0, 0)))


if __name__ == "__main__":
    key = jax.random.PRNGKey(0)
    B, C, H, W = 2, 4, 16, 16          # small NCHW input
    planes = 8                         # shortcut doubles the channel count
    x = jax.random.normal(key, (B, C, H, W), dtype=jnp.float32)

    out = lambda_layer(x, planes)
    out = jax.block_until_ready(out)

    ref = _reference(x, planes)
    assert out.shape == (B, planes, H // 2, W // 2), out.shape
    assert out.dtype == x.dtype
    np.testing.assert_allclose(np.asarray(out), np.asarray(ref), rtol=1e-6, atol=1e-6)

    print("KERNEL_OK")
</pallas_src>

<mosaic_0001>
module attributes {stable_mosaic.version = 11 : i64} {
  func.func @_lambda_shortcut_kernel(%arg0: i32, %arg1: memref<8x256xf32, #tpu.memory_space<vmem>>, %arg2: memref<256x64xbf16, #tpu.memory_space<vmem>>, %arg3: memref<2x8x64xf32, #tpu.memory_space<vmem>>) attributes {dimension_semantics = [#tpu.dimension_semantics<parallel>], iteration_bounds = array<i64: 1>, scalar_prefetch = 0 : i64, scratch_operands = 0 : i64, tpu.core_type = #tpu.core_type<tc>, window_params = [{transform_indices = @transform_0, window_bounds = array<i64: 8, 256>}, {pipeline_mode = #tpu.pipeline_mode<synchronous>, transform_indices = @transform_1, window_bounds = array<i64: 256, 64>}, {transform_indices = @transform_2, window_bounds = array<i64: 2, 8, 64>}]} {
    %c0 = arith.constant 0 : index
    %c0_0 = arith.constant 0 : index
    %0 = vector.load %arg2[%c0, %c0_0] : memref<256x64xbf16, #tpu.memory_space<vmem>>, vector<256x64xbf16>
    %c0_1 = arith.constant 0 : index
    %c0_2 = arith.constant 0 : index
    %1 = vector.load %arg1[%c0_1, %c0_2] : memref<8x256xf32, #tpu.memory_space<vmem>>, vector<8x256xf32>
    %2 = arith.truncf %1 : vector<8x256xf32> to vector<8x256xbf16>
    %3 = arith.extf %2 : vector<8x256xbf16> to vector<8x256xf32>
    %4 = arith.subf %1, %3 : vector<8x256xf32>
    %5 = arith.truncf %4 : vector<8x256xf32> to vector<8x256xbf16>
    %6 = arith.extf %5 : vector<8x256xbf16> to vector<8x256xf32>
    %7 = arith.subf %4, %6 : vector<8x256xf32>
    %8 = arith.truncf %7 : vector<8x256xf32> to vector<8x256xbf16>
    %cst = arith.constant dense<0.000000e+00> : vector<8x64xf32>
    %9 = tpu.matmul %2, %0, %cst {dimension_numbers = #tpu.dot_dimension_numbers<[1], [0], [0], [1], [0, 0, 1, 1], [], []>} : vector<8x256xbf16>, vector<256x64xbf16>, vector<8x64xf32> -> vector<8x64xf32>
    %cst_3 = arith.constant dense<0.000000e+00> : vector<8x64xf32>
    %10 = tpu.matmul %5, %0, %cst_3 {dimension_numbers = #tpu.dot_dimension_numbers<[1], [0], [0], [1], [0, 0, 1, 1], [], []>} : vector<8x256xbf16>, vector<256x64xbf16>, vector<8x64xf32> -> vector<8x64xf32>
    %11 = arith.addf %9, %10 : vector<8x64xf32>
    %cst_4 = arith.constant dense<0.000000e+00> : vector<8x64xf32>
    %12 = tpu.matmul %8, %0, %cst_4 {dimension_numbers = #tpu.dot_dimension_numbers<[1], [0], [0], [1], [0, 0, 1, 1], [], []>} : vector<8x256xbf16>, vector<256x64xbf16>, vector<8x64xf32> -> vector<8x64xf32>
    %13 = arith.addf %11, %12 : vector<8x64xf32>
    %14 = vector.shape_cast %13 : vector<8x64xf32> to vector<2x4x64xf32>
    %cst_5 = arith.constant 0.000000e+00 : f32
    %15 = vector.broadcast %cst_5 : f32 to vector<2x2x64xf32>
    %16 = tpu.concatenate %15, %14, %15 in 1 : vector<2x2x64xf32>, vector<2x4x64xf32>, vector<2x2x64xf32> -> vector<2x8x64xf32>
    %c0_6 = arith.constant 0 : index
    %c0_7 = arith.constant 0 : index
    %c0_8 = arith.constant 0 : index
    %17 = vector.load %arg3[%c0_6, %c0_7, %c0_8] : memref<2x8x64xf32, #tpu.memory_space<vmem>>, vector<2x8x64xf32>
    tpu.vector_store %arg3[%c0_6, %c0_7, %c0_8], %16 {strides = array<i32>} : memref<2x8x64xf32, #tpu.memory_space<vmem>>, vector<2x8x64xf32>,
    return
  }
  func.func @transform_0(%arg0: i32) -> (i32, i32) {
    %c0_i32 = arith.constant 0 : i32
    %c0_i32_0 = arith.constant 0 : i32
    return %arg0, %c0_i32 : i32, i32
  }
  func.func @transform_1(%arg0: i32) -> (i32, i32) {
    %c0_i32 = arith.constant 0 : i32
    %c0_i32_0 = arith.constant 0 : i32
    %c0_i32_1 = arith.constant 0 : i32
    return %c0_i32, %c0_i32_0 : i32, i32
  }
  func.func @transform_2(%arg0: i32) -> (i32, i32, i32) {
    %c0_i32 = arith.constant 0 : i32
    %c0_i32_0 = arith.constant 0 : i32
    %c0_i32_1 = arith.constant 0 : i32
    return %arg0, %c0_i32, %c0_i32_0 : i32, i32, i32
  }
}

</mosaic_0001>

<bundles_post_ra>
// kernel: tpu_custom_call.1
= control target key start
LH: loop header
LB: loop body
LE: loop exit
PB: predicated region body
PF: predicated region fallthrough
CT: control target
= control target key end

     0   :  { %s522_s0 = inlined_call_operand.vmem [shape: f32[8,256], index: 0, kind: input, shape index: {}]   ;;  %s523_s1 = inlined_call_operand.vmem [shape: bf16[256,64], index: 1, kind: input, shape index: {}]   ;;  %s524_s2 = inlined_call_operand.hbm [shape: f32[2,8,64], index: 2, kind: output, shape index: {}]  }
   0x1   :  { %v453_v0 = vld [vmem:[%s523_s1 + $0x78] sm:$0xff]   ;;  %v465_v2 = vld [vmem:[%s523_s1 + $0x70] sm:$0xff]   ;;  %v398_v4 = vld [vmem:[%s523_s1 + $0x68] sm:$0xff]  }
   0x2   :  { %v458_v1 = vld [vmem:[%s523_s1 + $0x38] sm:$0xff]   ;;  %325 = vmatprep.subr.bf16.mxu0 %v453_v0  ;;  %347 = vmatprep.subr.bf16.mxu1 %v453_v0  ;;  %v397_v3 = vld [vmem:[%s523_s1 + $0x30] sm:$0xff]   ;;  %v399_v5 = vld [vmem:[%s523_s1 + $0x28] sm:$0xff]  }
   0x3   :  { %326 = vmatpush3.bf16.msra.mxu0 %v458_v1  ;;  %348 = vmatpush3.bf16.msra.mxu1 %v458_v1  ;;  %v400_v6 = vld [vmem:[%s523_s1 + $0x60] sm:$0xff]   ;;  %v402_v8 = vld [vmem:[%s523_s1 + $0x58] sm:$0xff]   ;;  %v404_v10 = vld [vmem:[%s523_s1 + $0x50] sm:$0xff]  }
   0x4   :  { %327 = vmatprep.subr.bf16.mxu0 %v465_v2  ;;  %349 = vmatprep.subr.bf16.mxu1 %v465_v2  ;;  %v401_v7 = vld [vmem:[%s523_s1 + $0x20] sm:$0xff]   ;;  %v403_v9 = vld [vmem:[%s523_s1 + $0x18] sm:$0xff]   ;;  %v46_v11 = vld [vmem:[%s522_s0 + $0x8] sm:$0xff] }
   0x5   :  { %v45_v12 = vld [vmem:[%s522_s0] sm:$0xff] }
   0x7   :  { %328 = vmatpush3.bf16.msra.mxu0 %v397_v3  ;;  %350 = vmatpush3.bf16.msra.mxu1 %v397_v3 }
   0x8   :  { %329 = vmatprep.subr.bf16.mxu0 %v398_v4  ;;  %351 = vmatprep.subr.bf16.mxu1 %v398_v4 }
   0xb   :  { %330 = vmatpush3.bf16.msra.mxu0 %v399_v5  ;;  %352 = vmatpush3.bf16.msra.mxu1 %v399_v5 }
   0xc   :  { %331 = vmatprep.subr.bf16.mxu0 %v400_v6  ;;  %353 = vmatprep.subr.bf16.mxu1 %v400_v6 }
   0xf   :  { %332 = vmatpush3.bf16.msra.mxu0 %v401_v7  ;;  %354 = vmatpush3.bf16.msra.mxu1 %v401_v7 }
  0x10   :  { %333 = vmatprep.subr.bf16.mxu0 %v402_v8  ;;  %355 = vmatprep.subr.bf16.mxu1 %v402_v8 }
  0x11   :  { %7 = vsyncpa [#allocation3], 0  ;;  %v48_v13 = vpack.c.bf16 %v46_v11, %v46_v11  ;;  %v47_v14 = vpack.c.bf16 %v45_v12, %v45_v12  ;;  %v405_v15 = vld [vmem:[%s523_s1 + $0x10] sm:$0xff]   ;;  %v406_v17 = vld [vmem:[%s523_s1 + $0x48] sm:$0xff]   ;;  %vm284_vm0 = vcmask 1041408   ;;  %vm287_vm1 = vcmask 1045504  }
  0x12   :  { %v407_v20 = vld [vmem:[%s523_s1 + $0x8] sm:$0xff]   ;;  %v408_v22 = vld [vmem:[%s523_s1 + $0x40] sm:$0xff]   ;;  %vm290_vm2 = vcmask 523264  }
  0x13   :  { %334 = vmatpush3.bf16.msra.mxu0 %v403_v9  ;;  %356 = vmatpush3.bf16.msra.mxu1 %v403_v9  ;;  %v50_v16 = vunpack.c.l.bf16 %v48_v13  ;;  %v49_v19 = vunpack.c.l.bf16 %v47_v14  ;;  %v409_v25 = vld [vmem:[%s523_s1] sm:$0xff]   ;;  %s432_s1 = smov [#allocation2]  }
  0x14   :  { %335 = vmatprep.subr.bf16.mxu0 %v404_v10  ;;  %357 = vmatprep.subr.bf16.mxu1 %v404_v10  ;;  %s298_s16 = sshll.u32 %s432_s1, 4  ;;  %s299_s16 = int_to_ptr.vmem [resolvable:$true] %s298_s16 }
  0x15   :  { %v52_v18 = vsub.f32 %v46_v11, %v50_v16  ;;  %229 = vmatprep.mubr.bf16.mxu1 %v48_v13  ;;  %v51_v24 = vsub.f32 %v45_v12, %v49_v19  ;;  %s410_s17 = scalar_lea.vmem %s299_s16, 256  ;;  %p415_p1 = scmp.lt.s32.totalorder %s299_s16, %s299_s16 }
  0x16   :  { %p411_p0 = scmp.ne.s32.totalorder %s299_s16, %s410_s17  ;;  %p416_p2 = scmp.lt.s32.totalorder %s410_s17, %s410_s17 }
  0x17   :  { %336 = vmatpush3.bf16.msra.mxu0 %v405_v15  ;;  %358 = vmatpush3.bf16.msra.mxu1 %v405_v15  ;;  %v54_v21 = vpack.c.bf16 %v52_v18, %v52_v18  ;;  %v53_v27 = vpack.c.bf16 %v51_v24, %v51_v24 }
  0x18   :  { %337 = vmatprep.subr.bf16.mxu0 %v406_v17  ;;  %359 = vmatprep.subr.bf16.mxu1 %v406_v17  ;;  %p417_p3 = por %p416_p2, %p415_p1 }
  0x19   :  { %v56_v23 = vunpack.c.l.bf16 %v54_v21  ;;  %189 = vmatprep.mubr.bf16.mxu0 %v54_v21  ;;  %v55_v29 = vunpack.c.l.bf16 %v53_v27 }
  0x1a   :  { %p418_p4 = pnand %p417_p3, %p411_p0 }
  0x1b   :  { %338 = vmatpush3.bf16.msra.mxu0 %v407_v20  ;;  %360 = vmatpush3.bf16.msra.mxu1 %v407_v20  ;;  %v58_v26 = vsub.f32 %v52_v18, %v56_v23  ;;  %v57_v30 = vsub.f32 %v51_v24, %v55_v29 }
  0x1c   :  { %339 = vmatprep.subr.bf16.mxu0 %v408_v22  ;;  %361 = vmatprep.subr.bf16.mxu1 %v408_v22 }
  0x1d   :  { %v60_v28 = vpack.c.bf16 %v58_v26, %v58_v26  ;;  %v59_v31 = vpack.c.bf16 %v57_v30, %v57_v30 }
  0x1f   :  { %340 = vmatpush3.bf16.msra.mxu0 %v409_v25  ;;  %362 = vmatpush3.bf16.msra.mxu1 %v409_v25 }
  0x20   :  { %369 = vmatprep.subr.bf16.mxu0 %v453_v0 }
  0x22   :  { %190 = vmatmul.mubr.bf16.vlgmr.msra.gmra.mxu0 %v53_v27  ;;  %230 = vmatmul.mubr.bf16.vlgmr.msra.gmra.mxu1 %v47_v14 }
  0x23   :  { %370 = vmatpush3.bf16.msra.mxu0 %v458_v1  ;;  %269 = vmatprep.mubr.bf16.mxu0 %v60_v28 }
  0x24   :  { %371 = vmatprep.subr.bf16.mxu0 %v465_v2 }
  0x27   :  { %372 = vmatpush3.bf16.msra.mxu0 %v397_v3 }
  0x28   :  { %373 = vmatprep.subr.bf16.mxu0 %v398_v4 }
  0x2b   :  { %374 = vmatpush3.bf16.msra.mxu0 %v399_v5 }
  0x2c   :  { %375 = vmatprep.subr.bf16.mxu0 %v400_v6 }
  0x2f   :  { %376 = vmatpush3.bf16.msra.mxu0 %v401_v7 }
  0x30   :  { %377 = vmatprep.subr.bf16.mxu0 %v402_v8 }
  0x33   :  { %378 = vmatpush3.bf16.msra.mxu0 %v403_v9 }
  0x34   :  { %379 = vmatprep.subr.bf16.mxu0 %v404_v10 }
  0x37   :  { %380 = vmatpush3.bf16.msra.mxu0 %v405_v15 }
  0x38   :  { %381 = vmatprep.subr.bf16.mxu0 %v406_v17 }
  0x3b   :  { %382 = vmatpush3.bf16.msra.mxu0 %v407_v20 }
  0x3c   :  { %383 = vmatprep.subr.bf16.mxu0 %v408_v22 }
  0x3f   :  { %384 = vmatpush3.bf16.msra.mxu0 %v409_v25 }
  0x42   :  { %270 = vmatmul.mubr.bf16.vlgmr.msra.gmra.mxu0 %v59_v31 }
  0xe2   :  { %v341_v32 = vpop.f32.mrf.mxu0  ;;  %v363_v33 = vpop.f32.mrf.mxu1 }
  0xe4   :  { %v342_v34 = vpop.f32.mrf.mxu0  ;;  %v364_v35 = vpop.f32.mrf.mxu1 }
  0xe5   :  { %v343_v40 = vadd.f32 %v342_v34, %v341_v32  ;;  %v365_v41 = vadd.f32 %v364_v35, %v363_v33 }
  0xe6   :  { %v344_v36 = vpop.f32.mrf.mxu0  ;;  %v366_v37 = vpop.f32.mrf.mxu1 }
  0xe7   :  { %v232_v44 = vadd.f32 %v365_v41, %v343_v40 }
  0xe8   :  { %v345_v38 = vpop.f32.mrf.mxu0  ;;  %v367_v39 = vpop.f32.mrf.mxu1 }
 0x102   :  { %v385_v42 = vpop.f32.mrf.mxu0 }
 0x104   :  { %v386_v43 = vpop.f32.mrf.mxu0 }
 0x105   :  { %v387_v45 = vadd.f32 %v386_v43, %v385_v42 }
 0x106   :  { %v388_v46 = vpop.f32.mrf.mxu0 }
 0x107   :  { %v277_v47 = vadd.f32 %v387_v45, %v232_v44 }
 0x108   :  { %v389_v48 = vpop.f32.mrf.mxu0 }
 0x109   :  { %v279_v49 = vcombine.high %v277_v47, %v277_v47  ;;  %v280_v50 = vrot.slane %v277_v47, 6 }
 0x10b   :  { %v281_v51 = vrot.slane %v279_v49, 6  ;;  %v285_v52 = vsel %vm284_vm0, 0.0, %v280_v50 }
 0x10c   :  { %v288_v53 = vsel %vm287_vm1, %v285_v52, 0.0 }
 0x10d   :  { %v286_v54 = vsel %vm284_vm0, 0.0, %v281_v51  ;;  %291 = vst.msk [vmem:[#allocation2] sm:$0xff] %vm290_vm2, %v288_v53 }
 0x10e   :  { %v289_v55 = vsel %vm287_vm1, %v286_v54, 0.0 }
 0x10f   :  { %292 = vst.msk [vmem:[#allocation2 + $0x8] sm:$0xff] %vm290_vm2, %v289_v55 }
 0x110   :  { %421 = shalt.err (!%p418_p4)
}
 0x111   :  { %s433_s18 = smov 128   ;;  %s434_s19 = smov 8  }
 0x112   :  { %304 = dma.vmem_to_hbm [thread:$0]  %s299_s16, 256, %s524_s2, [#allocation3], %s433_s18, %s433_s18, %s434_s19  }
 0x113   :  { %430 = dma.done.wait [#allocation3], 256  }
 0x114   :  { %431 = vsyncadd [#allocation3], 4294967040 }
 0x115   :  { %308 = vsyncpa [#allocation3], 1 }

</bundles_post_ra>
